<compile_context>
chip_gen: v6e
topology: v6e:2x2x1
jax: 0.10.0
libtpu: 0.0.40
codegen_flags: <defaults>
</compile_context>

<pallas_src>
import math
from functools import partial

import jax
import jax.numpy as jnp
from jax.experimental import pallas as pl
from jax.experimental.pallas import tpu as pltpu

# DenseNet121 architecture constants (torchvision.models.densenet121)
GROWTH = 32
BN_SIZE = 4
BLOCK_CONFIG = (6, 12, 24, 16)
NUM_INIT_FEATURES = 64
BN_EPS = 1e-5
NUM_CONDITIONS = 14  # len(CONDITIONS) in the reference repo (ChestX-ray14 labels)

_MAX_TILE_M = 256   # rows per tile (sublane axis); capped so parallel axes get >=2 steps
_MAX_TILE_K = 2048  # contraction chunk


def _round_up(x, m):
    return ((x + m - 1) // m) * m


def _pick_tile(m, cap=_MAX_TILE_M):
    """Pick a row-tile size <= cap that is a multiple of 8 (prefer exact divisor)."""
    if m <= cap:
        t = m if m % 8 == 0 else _round_up(m, 8)
        return t, _round_up(m, t)
    for t in range(cap, 7, -8):
        if m % t == 0:
            return t, m
    return cap, _round_up(m, cap)


def _prep_row(v, width, pad_to, fill, dtype):
    if v is None:
        return jnp.full((1, pad_to), fill, dtype)
    v = v.reshape(1, width).astype(dtype)
    if pad_to != width:
        v = jnp.pad(v, ((0, 0), (0, pad_to - width)), constant_values=fill)
    return v


# ---------------------------------------------------------------------------
# Fused tiled matmul kernel:  out = epi( pro(A) @ W )
#   pro(A) = relu?(A * si + sh)           (bf16 per-K-column affine == preceding BN)
#   epi(Y) = sigmoid?/relu?(Y * so + oo)  (f32 per-N-column affine == following BN/bias)
# Both stages are compiled out entirely (static flags) when not needed.
# ---------------------------------------------------------------------------
def _fused_matmul_kernel(*refs, pre, pre_relu, post, post_relu, post_sigmoid):
    it = iter(refs)
    a_ref = next(it)
    w_ref = next(it)
    si_ref = next(it) if pre else None
    sh_ref = next(it) if pre else None
    so_ref = next(it) if post else None
    oo_ref = next(it) if post else None
    o_ref = next(it)
    acc_ref = next(it)

    k = pl.program_id(2)

    @pl.when(k == 0)
    def _init():
        acc_ref[...] = jnp.zeros_like(acc_ref)

    a = a_ref[...]                       # bf16, fed straight to the MXU when pre=False
    if pre:
        a = a * si_ref[...] + sh_ref[...]   # bf16 affine: half the VALU work of f32
        if pre_relu:
            a = jnp.maximum(a, 0)
    acc_ref[...] += jnp.dot(a, w_ref[...], preferred_element_type=jnp.float32)

    @pl.when(k == pl.num_programs(2) - 1)
    def _store():
        y = acc_ref[...]
        if post:
            y = y * so_ref[...] + oo_ref[...]
        if post_relu:
            y = jnp.maximum(y, 0.0)
        if post_sigmoid:
            # exp and the approximate reciprocal both land on the EUP slot (free).
            y = pl.reciprocal(1.0 + jnp.exp(-y), approx=True)
        o_ref[...] = y.astype(o_ref.dtype)


@partial(jax.jit, static_argnames=("pre_relu", "post_relu", "post_sigmoid", "out_dtype"))
def fused_matmul(a, w, si=None, sh=None, so=None, oo=None, *,
                 pre_relu=False, post_relu=False, post_sigmoid=False,
                 out_dtype=jnp.bfloat16):
    """A: (M, K), W: (K, N); si/sh: (1, K) or None; so/oo: (1, N) or None."""
    M, K = a.shape
    K2, N = w.shape
    assert K == K2
    pre = (si is not None) or (sh is not None)
    post = (so is not None) or (oo is not None)

    tm, Mp = _pick_tile(M, _MAX_TILE_M)
    Kp = _round_up(K, 128)                      # lane-aligned contraction
    if Kp <= _MAX_TILE_K:
        tk = Kp
    else:
        tk = _MAX_TILE_K
        Kp = _round_up(Kp, tk)
    tn = 256 if N >= 256 else 128               # fill the 256-wide MXU when possible;
    Np = _round_up(N, tn)                       # keep outputs lane-dense (>=128)

    a = a.astype(jnp.bfloat16)
    w = w.astype(jnp.bfloat16)
    if Mp != M or Kp != K:
        a = jnp.pad(a, ((0, Mp - M), (0, Kp - K)))
    if Kp != K or Np != N:
        w = jnp.pad(w, ((0, Kp - K), (0, Np - N)))

    args = [a, w]
    in_specs = [pl.BlockSpec((tm, tk), lambda i, j, k: (i, k)),
                pl.BlockSpec((tk, tn), lambda i, j, k: (k, j))]
    if pre:
        # Padded A columns are zero, so si fill=1 / sh fill=0 keeps them exactly zero.
        args += [_prep_row(si, K, Kp, 1.0, jnp.bfloat16),
                 _prep_row(sh, K, Kp, 0.0, jnp.bfloat16)]
        in_specs += [pl.BlockSpec((1, tk), lambda i, j, k: (0, k)),
                     pl.BlockSpec((1, tk), lambda i, j, k: (0, k))]
    if post:
        args += [_prep_row(so, N, Np, 1.0, jnp.float32),
                 _prep_row(oo, N, Np, 0.0, jnp.float32)]
        in_specs += [pl.BlockSpec((1, tn), lambda i, j, k: (0, j)),
                     pl.BlockSpec((1, tn), lambda i, j, k: (0, j))]

    grid = (Mp // tm, Np // tn, Kp // tk)
    out = pl.pallas_call(
        partial(_fused_matmul_kernel, pre=pre, pre_relu=pre_relu, post=post,
                post_relu=post_relu, post_sigmoid=post_sigmoid),
        out_shape=jax.ShapeDtypeStruct((Mp, Np), out_dtype),
        grid_spec=pltpu.PrefetchScalarGridSpec(
            num_scalar_prefetch=0,
            grid=grid,
            in_specs=in_specs,
            out_specs=pl.BlockSpec((tm, tn), lambda i, j, k: (i, j)),
            scratch_shapes=[pltpu.VMEM((tm, tn), jnp.float32)],
        ),
        compiler_params=pltpu.CompilerParams(
            dimension_semantics=("parallel", "parallel", "arbitrary"),
            vmem_limit_bytes=32 * 1024 * 1024),
    )(*args)
    if Mp != M or Np != N:
        out = out[:M, :N]
    return out


# ---------------------------------------------------------------------------
# Tiled per-channel affine (inference BatchNorm) — only used to emit encoded_images.
# ---------------------------------------------------------------------------
def _affine_kernel(x_ref, si_ref, sh_ref, o_ref, *, relu):
    y = x_ref[...].astype(jnp.float32) * si_ref[...] + sh_ref[...]
    if relu:
        y = jnp.maximum(y, 0.0)
    o_ref[...] = y.astype(o_ref.dtype)


@partial(jax.jit, static_argnames=("relu", "out_dtype"))
def pallas_affine(x, si, sh, *, relu=False, out_dtype=jnp.float32):
    M, C = x.shape
    tm, Mp = _pick_tile(M, _MAX_TILE_M)
    if Mp != M:
        x = jnp.pad(x, ((0, Mp - M), (0, 0)))
    out = pl.pallas_call(
        partial(_affine_kernel, relu=relu),
        out_shape=jax.ShapeDtypeStruct((Mp, C), out_dtype),
        grid_spec=pltpu.PrefetchScalarGridSpec(
            num_scalar_prefetch=0,
            grid=(Mp // tm,),
            in_specs=[pl.BlockSpec((tm, C), lambda i: (i, 0)),
                      pl.BlockSpec((1, C), lambda i: (0, 0)),
                      pl.BlockSpec((1, C), lambda i: (0, 0))],
            out_specs=pl.BlockSpec((tm, C), lambda i: (i, 0)),
        ),
        compiler_params=pltpu.CompilerParams(dimension_semantics=("parallel",)),
    )(x, si.reshape(1, C).astype(jnp.float32), sh.reshape(1, C).astype(jnp.float32))
    return out[:M] if Mp != M else out


# ---------------------------------------------------------------------------
# Tiled streaming pool: reduce over the window-tap grid axis with a VMEM accumulator.
# ---------------------------------------------------------------------------
def _pool_kernel(x_ref, o_ref, acc_ref, *, op, inv_count):
    t = pl.program_id(1)
    x = x_ref[0].astype(jnp.float32)

    @pl.when(t == 0)
    def _init():
        acc_ref[...] = x

    @pl.when(t > 0)
    def _acc():
        if op == "max":
            acc_ref[...] = jnp.maximum(acc_ref[...], x)
        else:
            acc_ref[...] = acc_ref[...] + x

    @pl.when(t == pl.num_programs(1) - 1)
    def _store():
        r = acc_ref[...]
        if op == "avg":
            r = r * inv_count
        o_ref[...] = r.astype(o_ref.dtype)


@partial(jax.jit, static_argnames=("op", "out_dtype"))
def pallas_pool(stacked, *, op, out_dtype=jnp.bfloat16):
    KK, M, C = stacked.shape
    tm, Mp = _pick_tile(M, _MAX_TILE_M)
    if Mp != M:
        stacked = jnp.pad(stacked, ((0, 0), (0, Mp - M), (0, 0)))
    out = pl.pallas_call(
        partial(_pool_kernel, op=op, inv_count=1.0 / KK),
        out_shape=jax.ShapeDtypeStruct((Mp, C), out_dtype),
        grid_spec=pltpu.PrefetchScalarGridSpec(
            num_scalar_prefetch=0,
            grid=(Mp // tm, KK),
            in_specs=[pl.BlockSpec((1, tm, C), lambda i, t: (t, i, 0))],
            out_specs=pl.BlockSpec((tm, C), lambda i, t: (i, 0)),
            scratch_shapes=[pltpu.VMEM((tm, C), jnp.float32)],
        ),
        compiler_params=pltpu.CompilerParams(
            dimension_semantics=("parallel", "arbitrary")),
    )(stacked)
    return out[:M] if Mp != M else out


# ---------------------------------------------------------------------------
# Layer wrappers (glue is pure data movement; compute is the fused kernels above)
# ---------------------------------------------------------------------------
def conv1x1(x_nhwc, w_mat, si=None, sh=None, so=None, oo=None, *,
            pre_relu=False, post_relu=False):
    B, H, W, Cin = x_nhwc.shape
    Cout = w_mat.shape[1]
    y = fused_matmul(x_nhwc.reshape(B * H * W, Cin), w_mat, si, sh, so, oo,
                     pre_relu=pre_relu, post_relu=post_relu)
    return y.reshape(B, H, W, Cout)


def conv_im2col(x_nhwc, w_mat, si=None, sh=None, so=None, oo=None, *,
                kh, kw, stride, padding, k_pad_to=None,
                pre_relu=False, post_relu=False):
    B, H, W, Cin = x_nhwc.shape
    Cout = w_mat.shape[1]
    Ho = (H + 2 * padding - kh) // stride + 1
    Wo = (W + 2 * padding - kw) // stride + 1
    xp = jnp.pad(x_nhwc, ((0, 0), (padding, padding), (padding, padding), (0, 0)))
    patches = [xp[:, i:i + Ho * stride:stride, j:j + Wo * stride:stride, :]
               for i in range(kh) for j in range(kw)]
    K = kh * kw * Cin
    if k_pad_to is not None and k_pad_to > K:
        patches.append(jnp.zeros((B, Ho, Wo, k_pad_to - K), x_nhwc.dtype))
        K = k_pad_to
    a = jnp.concatenate(patches, axis=-1).reshape(B * Ho * Wo, K)
    y = fused_matmul(a, w_mat, si, sh, so, oo, pre_relu=pre_relu, post_relu=post_relu)
    return y.reshape(B, Ho, Wo, Cout)


def _pool2d(x_nhwc, *, k, stride, padding, op):
    B, H, W, C = x_nhwc.shape
    Ho = (H + 2 * padding - k) // stride + 1
    Wo = (W + 2 * padding - k) // stride + 1
    # Zero padding is exact for max-pool here because the input is post-ReLU (>= 0)
    # and every window contains at least one real pixel.
    xp = jnp.pad(x_nhwc, ((0, 0), (padding, padding), (padding, padding), (0, 0)))
    wins = [xp[:, i:i + Ho * stride:stride, j:j + Wo * stride:stride, :]
            for i in range(k) for j in range(k)]
    stacked = jnp.stack(wins, axis=0).reshape(k * k, B * Ho * Wo, C)
    y = pallas_pool(stacked, op=op)
    return y.reshape(B, Ho, Wo, C)


# ---------------------------------------------------------------------------
# DenseNet121 features + Chexnet forward
# ---------------------------------------------------------------------------
def dense_layer_branch(x, p):
    # BN1+ReLU (prologue) -> conv1 1x1 -> BN2+ReLU (epilogue): single kernel launch.
    y = conv1x1(x, p["w1"], p["bn1_scale"], p["bn1_shift"],
                p["bn2_scale"], p["bn2_shift"], pre_relu=True, post_relu=True)
    # conv2 3x3 pad 1: no affine at all -> pure bf16 MXU matmul.
    y = conv_im2col(y, p["w2"], kh=3, kw=3, stride=1, padding=1)
    return y


def densenet_features(x_nhwc, dn):
    # conv0 7x7 s2 p3 (im2col K padded 147 -> 256) with fused norm0+ReLU epilogue.
    y = conv_im2col(x_nhwc.astype(jnp.bfloat16), dn["conv0_w"],
                    so=dn["bn0_scale"], oo=dn["bn0_shift"],
                    kh=7, kw=7, stride=2, padding=3,
                    k_pad_to=dn["conv0_w"].shape[0], post_relu=True)
    y = _pool2d(y, k=3, stride=2, padding=1, op="max")
    for bi, n_layers in enumerate(BLOCK_CONFIG):
        for li in range(n_layers):
            new = dense_layer_branch(y, dn[f"denseblock{bi + 1}"][li])
            y = jnp.concatenate([y, new], axis=-1)
        if bi != len(BLOCK_CONFIG) - 1:
            t = dn[f"transition{bi + 1}"]
            # BN+ReLU fused into the 1x1 transition conv prologue.
            y = conv1x1(y, t["w"], t["bn_scale"], t["bn_shift"], pre_relu=True)
            y = _pool2d(y, k=2, stride=2, padding=0, op="avg")
    return y  # bf16, pre-norm5


def chexnet_forward(x_nchw, fp):
    """Replicates Chexnet.forward: returns (encoded_images [NCHW], probs)."""
    x_nhwc = jnp.transpose(x_nchw, (0, 2, 3, 1))
    feat = densenet_features(x_nhwc, fp["densenet"])
    B, Hf, Wf, C = feat.shape
    # torchvision `features` ends with norm5 (no ReLU) -> this is `encoded_images`.
    enc = pallas_affine(feat.reshape(B * Hf * Wf, C),
                        fp["densenet"]["bn5_scale"], fp["densenet"]["bn5_shift"],
                        relu=False, out_dtype=jnp.float32)
    encoded_images = jnp.transpose(enc.reshape(B, Hf, Wf, C), (0, 3, 1, 2))  # NCHW
    # probs path: norm5 folded into the FC prologue; FC weights pre-permuted to NHWC
    # row order at fuse time, so no NCHW transpose / f32 tensor on this path.
    flat_nhwc = feat.reshape(B, Hf * Wf * C)
    probs = fused_matmul(flat_nhwc, fp["fc_w_nhwc"],
                         si=fp["fc_si"], sh=fp["fc_sh"], oo=fp["fc_b"],
                         post_sigmoid=True, out_dtype=jnp.float32)
    return encoded_images, probs


# ---------------------------------------------------------------------------
# Deterministic parameter initialization + inference-ready fusion
# ---------------------------------------------------------------------------
def _conv_init(key, cout, cin, kh, kw):
    fan_in = cin * kh * kw
    return jax.random.normal(key, (cout, cin, kh, kw), jnp.float32) * (1.0 / math.sqrt(fan_in))


def _bn_init(c):
    return dict(gamma=jnp.ones((c,), jnp.float32), beta=jnp.zeros((c,), jnp.float32),
                mean=jnp.zeros((c,), jnp.float32), var=jnp.ones((c,), jnp.float32))


def init_params(key, input_size=(64, 64), num_conditions=NUM_CONDITIONS):
    keys = iter(jax.random.split(key, 256))
    dn = {}
    dn["conv0"] = _conv_init(next(keys), NUM_INIT_FEATURES, 3, 7, 7)
    dn["norm0"] = _bn_init(NUM_INIT_FEATURES)
    num_features = NUM_INIT_FEATURES
    for bi, n_layers in enumerate(BLOCK_CONFIG):
        layers = []
        for _ in range(n_layers):
            layers.append(dict(
                norm1=_bn_init(num_features),
                conv1=_conv_init(next(keys), BN_SIZE * GROWTH, num_features, 1, 1),
                norm2=_bn_init(BN_SIZE * GROWTH),
                conv2=_conv_init(next(keys), GROWTH, BN_SIZE * GROWTH, 3, 3),
            ))
            num_features += GROWTH
        dn[f"denseblock{bi + 1}"] = layers
        if bi != len(BLOCK_CONFIG) - 1:
            dn[f"transition{bi + 1}"] = dict(
                norm=_bn_init(num_features),
                conv=_conv_init(next(keys), num_features // 2, num_features, 1, 1),
            )
            num_features //= 2
    dn["norm5"] = _bn_init(num_features)  # 1024
    enc_size = input_size[0] // 32
    lin_in = num_features * enc_size * enc_size
    fc_w = jax.random.normal(next(keys), (lin_in, num_conditions), jnp.float32) * (1.0 / math.sqrt(lin_in))
    fc_b = jnp.zeros((1, num_conditions), jnp.float32)
    return {"densenet": dn, "fc_w": fc_w, "fc_b": fc_b}


def _bn_fuse(bn):
    scale = bn["gamma"] / jnp.sqrt(bn["var"] + BN_EPS)
    shift = bn["beta"] - bn["mean"] * scale
    c = scale.shape[0]
    return scale.reshape(1, c).astype(jnp.float32), shift.reshape(1, c).astype(jnp.float32)


def _conv_mat(w, k_pad_to=None):
    cout, cin, kh, kw = w.shape
    m = jnp.transpose(w, (2, 3, 1, 0)).reshape(kh * kw * cin, cout)
    if k_pad_to is not None and k_pad_to > m.shape[0]:
        m = jnp.pad(m, ((0, k_pad_to - m.shape[0]), (0, 0)))
    return m.astype(jnp.bfloat16)


def fuse_params(raw):
    """Fold BN stats into scale/shift rows, pre-transpose/cast conv weights, and
    pre-permute the FC weights to NHWC row order with norm5 folded into its prologue."""
    dn_raw = raw["densenet"]
    dn = {}
    dn["conv0_w"] = _conv_mat(dn_raw["conv0"], k_pad_to=_round_up(3 * 7 * 7, 128))
    dn["bn0_scale"], dn["bn0_shift"] = _bn_fuse(dn_raw["norm0"])
    for bi, n_layers in enumerate(BLOCK_CONFIG):
        layers = []
        for lp in dn_raw[f"denseblock{bi + 1}"]:
            s1, h1 = _bn_fuse(lp["norm1"])
            s2, h2 = _bn_fuse(lp["norm2"])
            layers.append(dict(bn1_scale=s1, bn1_shift=h1, bn2_scale=s2, bn2_shift=h2,
                               w1=_conv_mat(lp["conv1"]), w2=_conv_mat(lp["conv2"])))
        dn[f"denseblock{bi + 1}"] = layers
        if bi != len(BLOCK_CONFIG) - 1:
            tp = dn_raw[f"transition{bi + 1}"]
            st, ht = _bn_fuse(tp["norm"])
            dn[f"transition{bi + 1}"] = dict(bn_scale=st, bn_shift=ht, w=_conv_mat(tp["conv"]))
    s5, h5 = _bn_fuse(dn_raw["norm5"])
    dn["bn5_scale"], dn["bn5_shift"] = s5, h5

    # FC head: rows of raw fc_w follow the channel-major (NCHW) flatten order
    # c*hw + p; permute once to NHWC order p*C + c so the probs path can consume the
    # bf16 NHWC features directly, with norm5 tiled across spatial positions.
    C5 = dn_raw["norm5"]["gamma"].shape[0]
    fc_w = raw["fc_w"]
    lin_in, ncls = fc_w.shape
    hw = lin_in // C5
    fc_w_nhwc = fc_w.reshape(C5, hw, ncls).transpose(1, 0, 2).reshape(hw * C5, ncls)
    fc_si = jnp.tile(s5.reshape(-1), hw).reshape(1, hw * C5).astype(jnp.float32)
    fc_sh = jnp.tile(h5.reshape(-1), hw).reshape(1, hw * C5).astype(jnp.float32)

    return {"densenet": dn,
            "fc_w_nhwc": fc_w_nhwc.astype(jnp.bfloat16),
            "fc_si": fc_si, "fc_sh": fc_sh,
            "fc_b": raw["fc_b"].astype(jnp.float32)}


# ---------------------------------------------------------------------------
if __name__ == "__main__":
    key = jax.random.PRNGKey(0)
    pkey, xkey = jax.random.split(key)

    # Smallest input consistent with the module: 3-channel NCHW image, spatial % 32 == 0.
    B, C, H, W = 2, 3, 64, 64
    raw_params = init_params(pkey, input_size=(H, W))
    params = fuse_params(raw_params)
    x = jax.random.normal(xkey, (B, C, H, W), jnp.float32)

    fwd = jax.jit(chexnet_forward)
    encoded_images, probs = fwd(x, params)
    jax.block_until_ready((encoded_images, probs))

    assert encoded_images.shape == (B, 1024, H // 32, W // 32), encoded_images.shape
    assert probs.shape == (B, NUM_CONDITIONS), probs.shape
    assert bool(jnp.all(jnp.isfinite(probs)))
    print("KERNEL_OK")
</pallas_src>

<mosaic_0001>
module attributes {stable_mosaic.version = 11 : i64} {
  func.func @_fused_matmul_kernel(%arg0: i32, %arg1: i32, %arg2: i32, %arg3: memref<256x256xbf16, #tpu.memory_space<vmem>>, %arg4: memref<256x128xbf16, #tpu.memory_space<vmem>>, %arg5: memref<1x128xf32, #tpu.memory_space<vmem>>, %arg6: memref<1x128xf32, #tpu.memory_space<vmem>>, %arg7: memref<256x128xbf16, #tpu.memory_space<vmem>>, %arg8: memref<256x128xf32, #tpu.memory_space<vmem>>) attributes {dimension_semantics = [#tpu.dimension_semantics<parallel>, #tpu.dimension_semantics<parallel>, #tpu.dimension_semantics<arbitrary>], iteration_bounds = array<i64: 8, 1, 1>, scalar_prefetch = 0 : i64, scratch_operands = 1 : i64, tpu.core_type = #tpu.core_type<tc>, window_params = [{transform_indices = @transform_0, window_bounds = array<i64: 256, 256>}, {transform_indices = @transform_1, window_bounds = array<i64: 256, 128>}, {transform_indices = @transform_2, window_bounds = array<i64: 1, 128>}, {transform_indices = @transform_3, window_bounds = array<i64: 1, 128>}, {transform_indices = @transform_4, window_bounds = array<i64: 256, 128>}]} {
    %c0_i32 = arith.constant 0 : i32
    %0 = arith.cmpi eq, %arg2, %c0_i32 : i32
    %1 = arith.extui %0 : i1 to i32
    %c0_i32_0 = arith.constant 0 : i32
    %2 = arith.cmpi ne, %1, %c0_i32_0 : i32
    scf.if %2 {
      %cst_10 = arith.constant 0.000000e+00 : f32
      %12 = vector.broadcast %cst_10 : f32 to vector<256x128xf32>
      %c0_11 = arith.constant 0 : index
      %c0_12 = arith.constant 0 : index
      %13 = vector.load %arg8[%c0_11, %c0_12] : memref<256x128xf32, #tpu.memory_space<vmem>>, vector<256x128xf32>
      tpu.vector_store %arg8[%c0_11, %c0_12], %12 {strides = array<i32>} : memref<256x128xf32, #tpu.memory_space<vmem>>, vector<256x128xf32>,
    } else {
    }
    %c0 = arith.constant 0 : index
    %c0_1 = arith.constant 0 : index
    %3 = vector.load %arg3[%c0, %c0_1] : memref<256x256xbf16, #tpu.memory_space<vmem>>, vector<256x256xbf16>
    %c0_2 = arith.constant 0 : index
    %c0_3 = arith.constant 0 : index
    %4 = vector.load %arg8[%c0_2, %c0_3] : memref<256x128xf32, #tpu.memory_space<vmem>>, vector<256x128xf32>
    %c0_4 = arith.constant 0 : index
    %c0_5 = arith.constant 0 : index
    %5 = vector.load %arg4[%c0_4, %c0_5] : memref<256x128xbf16, #tpu.memory_space<vmem>>, vector<256x128xbf16>
    %cst = arith.constant dense<0.000000e+00> : vector<256x128xf32>
    %6 = tpu.matmul %3, %5, %cst {dimension_numbers = #tpu.dot_dimension_numbers<[1], [0], [0], [1], [0, 0, 1, 1], [], []>} : vector<256x256xbf16>, vector<256x128xbf16>, vector<256x128xf32> -> vector<256x128xf32>
    %7 = arith.addf %4, %6 : vector<256x128xf32>
    %c0_6 = arith.constant 0 : index
    %c0_7 = arith.constant 0 : index
    %8 = vector.load %arg8[%c0_6, %c0_7] : memref<256x128xf32, #tpu.memory_space<vmem>>, vector<256x128xf32>
    tpu.vector_store %arg8[%c0_6, %c0_7], %7 {strides = array<i32>} : memref<256x128xf32, #tpu.memory_space<vmem>>, vector<256x128xf32>,
    %c0_i32_8 = arith.constant 0 : i32
    %9 = arith.cmpi eq, %arg2, %c0_i32_8 : i32
    %10 = arith.extui %9 : i1 to i32
    %c0_i32_9 = arith.constant 0 : i32
    %11 = arith.cmpi ne, %10, %c0_i32_9 : i32
    scf.if %11 {
      %c0_10 = arith.constant 0 : index
      %c0_11 = arith.constant 0 : index
      %12 = vector.load %arg8[%c0_10, %c0_11] : memref<256x128xf32, #tpu.memory_space<vmem>>, vector<256x128xf32>
      %c0_12 = arith.constant 0 : index
      %c0_13 = arith.constant 0 : index
      %13 = vector.load %arg5[%c0_12, %c0_13] : memref<1x128xf32, #tpu.memory_space<vmem>>, vector<1x128xf32>
      %14 = vector.broadcast %13 : vector<1x128xf32> to vector<256x128xf32>
      %15 = arith.mulf %12, %14 : vector<256x128xf32>
      %c0_14 = arith.constant 0 : index
      %c0_15 = arith.constant 0 : index
      %16 = vector.load %arg6[%c0_14, %c0_15] : memref<1x128xf32, #tpu.memory_space<vmem>>, vector<1x128xf32>
      %17 = vector.broadcast %16 : vector<1x128xf32> to vector<256x128xf32>
      %18 = arith.addf %15, %17 : vector<256x128xf32>
      %cst_16 = arith.constant 0.000000e+00 : f32
      %19 = vector.broadcast %cst_16 : f32 to vector<256x128xf32>
      %20 = arith.maximumf %18, %19 : vector<256x128xf32>
      %21 = arith.truncf %20 : vector<256x128xf32> to vector<256x128xbf16>
      %c0_17 = arith.constant 0 : index
      %c0_18 = arith.constant 0 : index
      %22 = vector.load %arg7[%c0_17, %c0_18] : memref<256x128xbf16, #tpu.memory_space<vmem>>, vector<256x128xbf16>
      tpu.vector_store %arg7[%c0_17, %c0_18], %21 {strides = array<i32>} : memref<256x128xbf16, #tpu.memory_space<vmem>>, vector<256x128xbf16>,
    } else {
    }
    return
  }
  func.func @transform_0(%arg0: i32, %arg1: i32, %arg2: i32) -> (i32, i32) {
    %c0_i32 = arith.constant 0 : i32
    return %arg0, %arg2 : i32, i32
  }
  func.func @transform_1(%arg0: i32, %arg1: i32, %arg2: i32) -> (i32, i32) {
    %c0_i32 = arith.constant 0 : i32
    return %arg2, %arg1 : i32, i32
  }
  func.func @transform_2(%arg0: i32, %arg1: i32, %arg2: i32) -> (i32, i32) {
    %c0_i32 = arith.constant 0 : i32
    %c0_i32_0 = arith.constant 0 : i32
    return %c0_i32, %arg1 : i32, i32
  }
  func.func @transform_3(%arg0: i32, %arg1: i32, %arg2: i32) -> (i32, i32) {
    %c0_i32 = arith.constant 0 : i32
    %c0_i32_0 = arith.constant 0 : i32
    return %c0_i32, %arg1 : i32, i32
  }
  func.func @transform_4(%arg0: i32, %arg1: i32, %arg2: i32) -> (i32, i32) {
    %c0_i32 = arith.constant 0 : i32
    return %arg0, %arg1 : i32, i32
  }
}

</mosaic_0001>

<bundles_post_ra>
// kernel: fused_matmul.1
= control target key start
LH: loop header
LB: loop body
LE: loop exit
PB: predicated region body
PF: predicated region fallthrough
CT: control target
= control target key end

     0   :  { %9 = vsyncpa [#allocation4], 0  ;;  %s2221_s0 = inlined_call_operand.hbm [shape: bf16[2048,256], index: 0, kind: input, shape index: {}]   ;;  %s2222_s1 = inlined_call_operand.vmem [shape: bf16[256,128], index: 1, kind: input, shape index: {}]   ;;  %s2223_s2 = inlined_call_operand.vmem [shape: f32[1,128], index: 2, kind: input, shape index: {}]   ;;  %s2224_s3 = inlined_call_operand.vmem [shape: f32[1,128], index: 3, kind: input, shape index: {}]   ;;  %s2225_s4 = inlined_call_operand.vmem [shape: bf16[2048,128], index: 4, kind: output, shape index: {}]  }
   0x1   :  { %11 = vsyncpa [#allocation4 + $0x1], 0  ;;  %s1952_s15 = smov 0   ;;  %s1954_s16 = smov 0  }
   0x2   :  { %s1956_s17 = smov 0   ;;  %s1958_s18 = smov 0  }
   0x3   :  { %s1960_s19 = smov 0   ;;  %s1962_s20 = smov 0  }
   0x4 LB: > { %s1367_s21 = sadd.s32 4294967295, %s1922_s20   ;;  %s36_s22 = sadd.s32 1, %s1918_s19  ;;  %s1922_s20 = sphi %s1962_s20, %s17_s20   ;;  %s1918_s19 = sphi %s1960_s19, %s2233_s19   ;;  %s1914_s18 = sphi %s1958_s18, %s2232_s18   ;;  %s1910_s17 = sphi %s1956_s17, %s2231_s17   ;;  %s1906_s16 = sphi %s1954_s16, %s2230_s16   ;;  %s1902_s15 = sphi %s1952_s15, %s2229_s15  }
   0x5   : > { %p38_p0 = scmp.ge.s32.totalorder %s36_s22, 8  ;;  %s45_s23 = sadd.s32 1, %s1910_s17 }
   0x6   : > { %p52_p1 = scmp.ne.s32.totalorder %s1910_s17, %s1906_s16  ;;  %p53_p2 = scmp.eq.s32.totalorder %s1922_s20, 0 }
   0x7   : > { %s2235_s22 = smov (%p38_p0, %s36_s22), 0  ;;  %p58_p4 = scmp.ne.s32.totalorder %s1906_s16, %s1902_s15 }
   0x8   : > { %p1988_p3 = por %p53_p2, %p52_p1  ;;  %s40_s25 = ssub.s32 %s1918_s19, %s2235_s22 }
   0x9   : > { %p59_p5 = scmp.eq.s32.totalorder %s1367_s21, 0  ;;  %p43_p6 = scmp.eq.s32.totalorder %s40_s25, 0 }
   0xa   : > { %p1729_p8 = scmp.lt.s32.totalorder %s1922_s20, 8  ;;  %s214_s28 = sand.u32 1, %s1910_s17  }
   0xb   : > { %p1995_p7 = por %p59_p5, %p58_p4  ;;  %s1467_s29 = sshll.u32 %s1918_s19, 12 }
   0xc   : > { %s2001_s27 = scalar_select %p43_p6, %s1910_s17, %s45_s23  }
   0xd   : > { %s1374_s30 = sshll.u32 %s214_s28, 8  ;;  %s227_s7 = scalar_lea.hbm %s2221_s0, %s1467_s29 }
   0xe   : > { %s218_s8 = scalar_lea.vmem [#allocation3], %s1374_s30  ;;  %p2010_p9 = pnand %p1729_p8, %p1988_p3 }
   0xf   : > { %s228_s9 = sshll.u32 %s218_s8, 4  ;;  %s215_s11 = scalar_lea.sflag [#allocation4], %s214_s28  ;;  %s229_s9 = int_to_ptr.vmem [resolvable:$true] %s228_s9 }
  0x10   : > { %p1846_p10 = pneg %p2010_p9  ;;  %s1857_s12 = scalar_lea.vmem %s229_s9, 4096 }
  0x11   : > { %p1858_p11 = scmp.ne.s32.totalorder %s229_s9, %s1857_s12  ;;  %s1924_s13 = smov [#allocation3]  }
  0x12   : > { %s1862_s14 = sshll.u32 %s1924_s13, 4  ;;  %s1863_s14 = int_to_ptr.vmem [resolvable:$false] %s1862_s14 }
  0x13   : > { %p1860_p12 = pnand %p1858_p11, %p1846_p10  ;;  %s1864_s15 = scalar_lea.vmem %s1863_s14, 8192 }
  0x14   : > { %p1865_p0 = scmp.lt.s32.totalorder %s229_s9, %s1863_s14  ;;  %p1866_p1 = scmp.lt.s32.totalorder %s1864_s15, %s1857_s12 }
  0x15   : > { %p1861_p13 = pneg %p1860_p12 }
  0x16   : > { %p1867_p2 = por %p1866_p1, %p1865_p0 }
  0x18   : > { %p1868_p3 = pnand %p1867_p2, %p1861_p13 }
  0x1a   : > { %1871 = shalt.err (!%p1868_p3)
}
  0x1b   : > { %s1925_s21 = smov 128   ;;  %s1926_s23 = smov 8  }
  0x1c   : > { %1728 = dma.hbm_to_vmem [thread:$0]  (!%p2010_p9), %s227_s7, 4096, %s229_s9, %s215_s11, %s1925_s21, %s1925_s21, %s1926_s23  }
  0x1d   : > { %p1378_p4 = scmp.ge.s32.totalorder %s1922_s20, 1  ;;  %p236_p5 = scmp.lt.s32.totalorder %s1922_s20, 9 }
  0x1f   : > { %p237_p6 = pnand %p1378_p4, %p236_p5 }
  0x20   : > { %s242_s24 = sand.u32 (!%p237_p6), 1, %s1906_s16  }
  0x21   : > { %240 = sbr.rel (%p237_p6) target bundleno = 338 (0x152), region = 36  ;;  %s1379_s25 = sshll.u32 (!%p237_p6), %s242_s24, 8 }
  0x22   : > { %s243_s28 = scalar_lea.sflag (!%p237_p6), [#allocation4], %s242_s24  ;;  %s2021_s29 = scalar_lea.vmem (!%p237_p6), [#allocation3], %s1379_s25 }
  0x26   : > { %1897 = dma.done.wait (%p1995_p7), %s243_s28, 4096  }
  0x27   : > { %1899 = vsyncadd (%p1995_p7), %s243_s28, 4294963200  ;;  %v1780_v0 = vld [vmem:[%s2222_s1 + $0x78] sm:$0xff]   ;;  %v1782_v2 = vld [vmem:[%s2222_s1 + $0x70] sm:$0xff]   ;;  %s1380_s23 = sshll.u32 %s1914_s18, 5 }
  0x28   : > { %v1781_v1 = vld [vmem:[%s2222_s1 + $0x38] sm:$0xff]   ;;  %1595 = vmatprep.subr.bf16.mxu0 %v1780_v0  ;;  %1707 = vmatprep.subr.bf16.mxu1 %v1780_v0  ;;  %v1783_v3 = vld [vmem:[%s2222_s1 + $0x30] sm:$0xff]   ;;  %v1784_v4 = vld [vmem:[%s2222_s1 + $0x68] sm:$0xff]   ;;  %p306_p7 = scmp.lt.s32.totalorder %s1380_s23, 255 }
  0x29   : > { %1596 = vmatpush3.bf16.msra.mxu0 %v1781_v1  ;;  %1715 = vmatpush3.bf16.msra.mxu1 %v1781_v1  ;;  %v1785_v5 = vld [vmem:[%s2222_s1 + $0x28] sm:$0xff]   ;;  %v1786_v6 = vld [vmem:[%s2222_s1 + $0x60] sm:$0xff]   ;;  %v1788_v8 = vld [vmem:[%s2222_s1 + $0x58] sm:$0xff]  }
  0x2a   : > { %1597 = vmatprep.subr.bf16.mxu0 %v1782_v2  ;;  %1708 = vmatprep.subr.bf16.mxu1 %v1782_v2  ;;  %v1787_v7 = vld [vmem:[%s2222_s1 + $0x20] sm:$0xff]   ;;  %v1789_v9 = vld [vmem:[%s2222_s1 + $0x18] sm:$0xff]   ;;  %v1790_v10 = vld [vmem:[%s2222_s1 + $0x50] sm:$0xff]   ;;  %s2237_s23 = smov (!%p306_p7, %s1380_s23), 255 }
  0x2b   : > { %v1798_v11 = vld [vmem:[%s2021_s29 + $0x4] ss:$8 sps:$4 sm:$0xff]   ;;  %v1791_v13 = vld [vmem:[%s2222_s1 + $0x10] sm:$0xff]   ;;  %v1796_v18 = vld [vmem:[%s2021_s29] ss:$8 sps:$4 sm:$0xff]   ;;  %s1381_s18 = sshll.u32 %s2237_s23, 2 }
  0x2c   : > { %v1801_v12 = vld [vmem:[%s2021_s29 + $0x84] ss:$8 sps:$4 sm:$0xff]   ;;  %735 = vmatprep.mubr.bf16.mxu0 %v1798_v11  ;;  %v1799_v19 = vld [vmem:[%s2021_s29 + $0x80] ss:$8 sps:$4 sm:$0xff]   ;;  %v1802_v20 = vld [vmem:[%s2021_s29 + $0x14] ss:$8 sps:$4 sm:$0xff]   ;;  %s2129_s6 = scalar_lea.vmem %s2225_s4, %s1381_s18 }
  0x2d   : > { %1598 = vmatpush3.bf16.msra.mxu0 %v1783_v3  ;;  %1716 = vmatpush3.bf16.msra.mxu1 %v1783_v3  ;;  %v1792_v14 = vld [vmem:[%s2222_s1 + $0x48] sm:$0xff]   ;;  %v1794_v16 = vld [vmem:[%s2222_s1 + $0x40] sm:$0xff]   ;;  %v1804_v21 = vld [vmem:[%s2021_s29 + $0x94] ss:$8 sps:$4 sm:$0xff]  }
  0x2e   : > { %1599 = vmatprep.subr.bf16.mxu0 %v1784_v4  ;;  %1709 = vmatprep.subr.bf16.mxu1 %v1784_v4  ;;  %v1793_v15 = vld [vmem:[%s2222_s1 + $0x8] sm:$0xff]   ;;  %v1795_v17 = vld [vmem:[%s2222_s1] sm:$0xff]   ;;  %v1806_v22 = vld [vmem:[%s2021_s29 + $0x10] ss:$8 sps:$4 sm:$0xff]  }
  0x2f   : > { %799 = vmatprep.mubr.bf16.mxu1 %v1801_v12  ;;  %v1807_v23 = vld [vmem:[%s2021_s29 + $0x90] ss:$8 sps:$4 sm:$0xff]   ;;  %v1808_v24 = vld [vmem:[%s2021_s29 + $0x24] ss:$8 sps:$4 sm:$0xff]   ;;  %v1812_v26 = vld [vmem:[%s2021_s29 + $0x20] ss:$8 sps:$4 sm:$0xff]  }
  0x30   : > { %v1810_v25 = vld [vmem:[%s2021_s29 + $0xa4] ss:$8 sps:$4 sm:$0xff]   ;;  %v1813_v27 = vld [vmem:[%s2021_s29 + $0xa0] ss:$8 sps:$4 sm:$0xff]   ;;  %v1814_v28 = vld [vmem:[%s2021_s29 + $0x34] ss:$8 sps:$4 sm:$0xff]  }
  0x31   : > { %1600 = vmatpush3.bf16.msra.mxu0 %v1785_v5  ;;  %1717 = vmatpush3.bf16.msra.mxu1 %v1785_v5  ;;  %v1816_v29 = vld [vmem:[%s2021_s29 + $0xb4] ss:$8 sps:$4 sm:$0xff]   ;;  %v1818_v30 = vld [vmem:[%s2021_s29 + $0x30] ss:$8 sps:$4 sm:$0xff]   ;;  %v1820_v32 = vld [vmem:[%s2021_s29 + $0x44] ss:$8 sps:$4 sm:$0xff]  }
  0x32   : > { %1601 = vmatprep.subr.bf16.mxu0 %v1786_v6  ;;  %1710 = vmatprep.subr.bf16.mxu1 %v1786_v6  ;;  %v1819_v31 = vld [vmem:[%s2021_s29 + $0xb0] ss:$8 sps:$4 sm:$0xff]   ;;  %v1822_v33 = vld [vmem:[%s2021_s29 + $0xc4] ss:$8 sps:$4 sm:$0xff]   ;;  %v1824_v34 = vld [vmem:[%s2021_s29 + $0x40] ss:$8 sps:$4 sm:$0xff]  }
  0x33   : > { %v1825_v35 = vld [vmem:[%s2021_s29 + $0xc0] ss:$8 sps:$4 sm:$0xff]   ;;  %v1826_v36 = vld [vmem:[%s2021_s29 + $0x54] ss:$8 sps:$4 sm:$0xff]   ;;  %v1830_v38 = vld [vmem:[%s2021_s29 + $0x50] ss:$8 sps:$4 sm:$0xff]  }
  0x34   : > { %v1828_v37 = vld [vmem:[%s2021_s29 + $0xd4] ss:$8 sps:$4 sm:$0xff]   ;;  %v1831_v39 = vld [vmem:[%s2021_s29 + $0xd0] ss:$8 sps:$4 sm:$0xff]   ;;  %v1832_v40 = vld [vmem:[%s2021_s29 + $0x64] ss:$8 sps:$4 sm:$0xff]  }
  0x35   : > { %1602 = vmatpush3.bf16.msra.mxu0 %v1787_v7  ;;  %1718 = vmatpush3.bf16.msra.mxu1 %v1787_v7  ;;  %v1834_v41 = vld [vmem:[%s2021_s29 + $0xe4] ss:$8 sps:$4 sm:$0xff]   ;;  %v1836_v42 = vld [vmem:[%s2021_s29 + $0x60] ss:$8 sps:$4 sm:$0xff]   ;;  %v1838_v44 = vld [vmem:[%s2021_s29 + $0x74] ss:$8 sps:$4 sm:$0xff]  }
  0x36   : > { %1603 = vmatprep.subr.bf16.mxu0 %v1788_v8  ;;  %1711 = vmatprep.subr.bf16.mxu1 %v1788_v8  ;;  %v1837_v43 = vld [vmem:[%s2021_s29 + $0xe0] ss:$8 sps:$4 sm:$0xff]   ;;  %v1840_v45 = vld [vmem:[%s2021_s29 + $0xf4] ss:$8 sps:$4 sm:$0xff]   ;;  %v1842_v46 = vld [vmem:[%s2021_s29 + $0x70] ss:$8 sps:$4 sm:$0xff]  }
  0x37   : > { %v1843_v47 = vld [vmem:[%s2021_s29 + $0xf0] ss:$8 sps:$4 sm:$0xff]   ;;  %v2111_v51 = vld [vmem:[%s2223_s2] ss:$0 sm:$0xff] }
  0x38   : > { %v2118_v59 = vld [vmem:[%s2224_s3] ss:$0 sm:$0xff] }
  0x39   : > { %1604 = vmatpush3.bf16.msra.mxu0 %v1789_v9  ;;  %1719 = vmatpush3.bf16.msra.mxu1 %v1789_v9 }
  0x3a   : > { %1605 = vmatprep.subr.bf16.mxu0 %v1790_v10  ;;  %1712 = vmatprep.subr.bf16.mxu1 %v1790_v10 }
  0x3d   : > { %1606 = vmatpush3.bf16.msra.mxu0 %v1791_v13  ;;  %1720 = vmatpush3.bf16.msra.mxu1 %v1791_v13 }
  0x3e   : > { %1607 = vmatprep.subr.bf16.mxu0 %v1792_v14  ;;  %1713 = vmatprep.subr.bf16.mxu1 %v1792_v14 }
  0x41   : > { %1608 = vmatpush3.bf16.msra.mxu0 %v1793_v15  ;;  %1721 = vmatpush3.bf16.msra.mxu1 %v1793_v15 }
  0x42   : > { %1609 = vmatprep.subr.bf16.mxu0 %v1794_v16  ;;  %1714 = vmatprep.subr.bf16.mxu1 %v1794_v16 }
  0x45   : > { %1610 = vmatpush3.bf16.msra.mxu0 %v1795_v17  ;;  %1722 = vmatpush3.bf16.msra.mxu1 %v1795_v17 }
  0x48   : > { %736 = vmatmul.mubr.bf16.vlgmr.msra.gmra.mxu0 %v1796_v18  ;;  %800 = vmatmul.mubr.bf16.vlgmr.msra.gmra.mxu1 %v1799_v19 }
  0x49   : > { %743 = vmatprep.mubr.bf16.mxu0 %v1802_v20  ;;  %807 = vmatprep.mubr.bf16.mxu1 %v1804_v21 }
  0x50   : > { %744 = vmatmul.mubr.bf16.gmra.mxu0 %v1806_v22  ;;  %808 = vmatmul.mubr.bf16.gmra.mxu1 %v1807_v23 }
  0x51   : > { %751 = vmatprep.mubr.bf16.mxu0 %v1808_v24  ;;  %815 = vmatprep.mubr.bf16.mxu1 %v1810_v25 }
  0x58   : > { %752 = vmatmul.mubr.bf16.gmra.mxu0 %v1812_v26  ;;  %816 = vmatmul.mubr.bf16.gmra.mxu1 %v1813_v27 }
  0x59   : > { %759 = vmatprep.mubr.bf16.mxu0 %v1814_v28  ;;  %823 = vmatprep.mubr.bf16.mxu1 %v1816_v29 }
  0x60   : > { %760 = vmatmul.mubr.bf16.gmra.mxu0 %v1818_v30  ;;  %824 = vmatmul.mubr.bf16.gmra.mxu1 %v1819_v31 }
  0x61   : > { %767 = vmatprep.mubr.bf16.mxu0 %v1820_v32  ;;  %831 = vmatprep.mubr.bf16.mxu1 %v1822_v33 }
  0x68   : > { %768 = vmatmul.mubr.bf16.gmra.mxu0 %v1824_v34  ;;  %832 = vmatmul.mubr.bf16.gmra.mxu1 %v1825_v35 }
  0x69   : > { %775 = vmatprep.mubr.bf16.mxu0 %v1826_v36  ;;  %839 = vmatprep.mubr.bf16.mxu1 %v1828_v37 }
  0x70   : > { %776 = vmatmul.mubr.bf16.gmra.mxu0 %v1830_v38  ;;  %840 = vmatmul.mubr.bf16.gmra.mxu1 %v1831_v39 }
  0x71   : > { %783 = vmatprep.mubr.bf16.mxu0 %v1832_v40  ;;  %847 = vmatprep.mubr.bf16.mxu1 %v1834_v41 }
  0x78   : > { %784 = vmatmul.mubr.bf16.gmra.mxu0 %v1836_v42  ;;  %848 = vmatmul.mubr.bf16.gmra.mxu1 %v1837_v43 }
  0x79   : > { %791 = vmatprep.mubr.bf16.mxu0 %v1838_v44  ;;  %855 = vmatprep.mubr.bf16.mxu1 %v1840_v45 }
  0x80   : > { %792 = vmatmul.mubr.bf16.gmra.mxu0 %v1842_v46  ;;  %856 = vmatmul.mubr.bf16.gmra.mxu1 %v1843_v47 }
 0x108   : > { %v1611_v48 = vpop.f32.mrf.mxu0  ;;  %v1659_v49 = vpop.f32.mrf.mxu1 }
 0x10a   : > { %v1612_v50 = vpop.f32.mrf.mxu0  ;;  %v1660_v52 = vpop.f32.mrf.mxu1 }
 0x10b   : > { %v1613_v53 = vadd.f32 %v1612_v50, %v1611_v48  ;;  %v1661_v54 = vadd.f32 %v1660_v52, %v1659_v49 }
 0x10c   : > { %v1614_v55 = vpop.f32.mrf.mxu0  ;;  %v1662_v56 = vpop.f32.mrf.mxu1 }
 0x10d   : > { %v970_v57 = vmul.f32 %v1613_v53, %v2111_v51  ;;  %v986_v58 = vmul.f32 %v1661_v54, %v2111_v51 }
 0x10e   : > { %v1615_v60 = vpop.f32.mrf.mxu0  ;;  %v1663_v61 = vpop.f32.mrf.mxu1 }
 0x10f   : > { %v1616_v62 = vadd.f32 %v1615_v60, %v1614_v55  ;;  %v1664_v63 = vadd.f32 %v1663_v61, %v1662_v56  ;;  %v1009_v2 = vadd.f32 %v2118_v59, %v970_v57  ;;  %v1025_v3 = vadd.f32 %v2118_v59, %v986_v58 }
 0x110   : > { %v1617_v0 = vpop.f32.mrf.mxu0  ;;  %v1665_v1 = vpop.f32.mrf.mxu1 }
 0x111   : > { %v971_v4 = vmul.f32 %v1616_v62, %v2111_v51  ;;  %v987_v5 = vmul.f32 %v1664_v63, %v2111_v51  ;;  %v1041_v14 = vmax.f32 %v1009_v2, 0.0  ;;  %v1057_v15 = vmax.f32 %v1025_v3, 0.0 }
 0x112   : > { %v1618_v6 = vpop.f32.mrf.mxu0  ;;  %v1666_v7 = vpop.f32.mrf.mxu1 }
 0x113   : > { %v1010_v8 = vadd.f32 %v2118_v59, %v971_v4  ;;  %v1026_v9 = vadd.f32 %v2118_v59, %v987_v5  ;;  %v1619_v10 = vadd.f32 %v1618_v6, %v1617_v0  ;;  %v1667_v11 = vadd.f32 %v1666_v7, %v1665_v1 }
 0x114   : > { %v1620_v12 = vpop.f32.mrf.mxu0  ;;  %v1668_v13 = vpop.f32.mrf.mxu1 }
 0x115   : > { %v1042_v16 = vmax.f32 %v1010_v8, 0.0  ;;  %v1058_v17 = vmax.f32 %v1026_v9, 0.0  ;;  %v972_v18 = vmul.f32 %v1619_v10, %v2111_v51  ;;  %v988_v19 = vmul.f32 %v1667_v11, %v2111_v51 }
 0x116   : > { %v1621_v20 = vpop.f32.mrf.mxu0  ;;  %v1669_v21 = vpop.f32.mrf.mxu1 }
 0x117   : > { %v1503_v22 = vpack.c.bf16 %v1042_v16, %v1041_v14  ;;  %v1543_v23 = vpack.c.bf16 %v1058_v17, %v1057_v15  ;;  %v1622_v24 = vadd.f32 %v1621_v20, %v1620_v12  ;;  %v1670_v25 = vadd.f32 %v1669_v21, %v1668_v13 }
 0x118   : > { %v1623_v26 = vpop.f32.mrf.mxu0  ;;  %v1671_v27 = vpop.f32.mrf.mxu1  ;;  %v1011_v28 = vadd.f32 %v2118_v59, %v972_v18  ;;  %v1027_v29 = vadd.f32 %v2118_v59, %v988_v19 }
 0x119   : > { %1504 = vst [vmem:[%s2129_s6] sm:$0xff] %v1503_v22   ;;  %1587 = vst [vmem:[%s2129_s6 + $0x40] sm:$0xff] %v1543_v23   ;;  %v973_v30 = vmul.f32 %v1622_v24, %v2111_v51  ;;  %v989_v31 = vmul.f32 %v1670_v25, %v2111_v51 }
 0x11a   : > { %v1624_v32 = vpop.f32.mrf.mxu0  ;;  %v1672_v33 = vpop.f32.mrf.mxu1  ;;  %v1043_v42 = vmax.f32 %v1011_v28, 0.0  ;;  %v1059_v43 = vmax.f32 %v1027_v29, 0.0 }
 0x11b   : > { %v1625_v34 = vadd.f32 %v1624_v32, %v1623_v26  ;;  %v1673_v35 = vadd.f32 %v1672_v33, %v1671_v27  ;;  %v1012_v36 = vadd.f32 %v2118_v59, %v973_v30  ;;  %v1028_v37 = vadd.f32 %v2118_v59, %v989_v31 }
 0x11c   : > { %v1626_v38 = vpop.f32.mrf.mxu0  ;;  %v1674_v39 = vpop.f32.mrf.mxu1 }
 0x11d   : > { %v974_v40 = vmul.f32 %v1625_v34, %v2111_v51  ;;  %v990_v41 = vmul.f32 %v1673_v35, %v2111_v51  ;;  %v1044_v44 = vmax.f32 %v1012_v36, 0.0  ;;  %v1060_v45 = vmax.f32 %v1028_v37, 0.0 }
 0x11e   : > { %v1627_v46 = vpop.f32.mrf.mxu0  ;;  %v1675_v47 = vpop.f32.mrf.mxu1 }
 0x11f   : > { %v1628_v48 = vadd.f32 %v1627_v46, %v1626_v38  ;;  %v1676_v49 = vadd.f32 %v1675_v47, %v1674_v39  ;;  %v1508_v50 = vpack.c.bf16 %v1044_v44, %v1043_v42  ;;  %v1548_v52 = vpack.c.bf16 %v1060_v45, %v1059_v43 }
 0x120   : > { %v1629_v53 = vpop.f32.mrf.mxu0  ;;  %v1677_v54 = vpop.f32.mrf.mxu1  ;;  %v1013_v55 = vadd.f32 %v2118_v59, %v974_v40  ;;  %v1029_v56 = vadd.f32 %v2118_v59, %v990_v41 }
 0x121   : > { %v975_v57 = vmul.f32 %v1628_v48, %v2111_v51  ;;  %v991_v58 = vmul.f32 %v1676_v49, %v2111_v51  ;;  %1580 = vst [vmem:[%s2129_s6 + $0x8] sm:$0xff] %v1508_v50   ;;  %1588 = vst [vmem:[%s2129_s6 + $0x48] sm:$0xff] %v1548_v52  }
 0x122   : > { %v1630_v60 = vpop.f32.mrf.mxu0  ;;  %v1678_v61 = vpop.f32.mrf.mxu1  ;;  %v1045_v4 = vmax.f32 %v1013_v55, 0.0  ;;  %v1061_v5 = vmax.f32 %v1029_v56, 0.0 }
 0x123   : > { %v1014_v62 = vadd.f32 %v2118_v59, %v975_v57  ;;  %v1030_v63 = vadd.f32 %v2118_v59, %v991_v58  ;;  %v1631_v0 = vadd.f32 %v1630_v60, %v1629_v53  ;;  %v1679_v1 = vadd.f32 %v1678_v61, %v1677_v54 }
 0x124   : > { %v1632_v2 = vpop.f32.mrf.mxu0  ;;  %v1680_v3 = vpop.f32.mrf.mxu1 }
 0x125   : > { %v1046_v6 = vmax.f32 %v1014_v62, 0.0  ;;  %v1062_v7 = vmax.f32 %v1030_v63, 0.0  ;;  %v976_v8 = vmul.f32 %v1631_v0, %v2111_v51  ;;  %v992_v9 = vmul.f32 %v1679_v1, %v2111_v51 }
 0x126   : > { %v1633_v10 = vpop.f32.mrf.mxu0  ;;  %v1681_v11 = vpop.f32.mrf.mxu1 }
 0x127   : > { %v1513_v12 = vpack.c.bf16 %v1046_v6, %v1045_v4  ;;  %v1553_v13 = vpack.c.bf16 %v1062_v7, %v1061_v5  ;;  %v1634_v14 = vadd.f32 %v1633_v10, %v1632_v2  ;;  %v1682_v15 = vadd.f32 %v1681_v11, %v1680_v3 }
 0x128   : > { %v1635_v16 = vpop.f32.mrf.mxu0  ;;  %v1683_v17 = vpop.f32.mrf.mxu1  ;;  %v1015_v18 = vadd.f32 %v2118_v59, %v976_v8  ;;  %v1031_v19 = vadd.f32 %v2118_v59, %v992_v9 }
 0x129   : > { %1581 = vst [vmem:[%s2129_s6 + $0x10] sm:$0xff] %v1513_v12   ;;  %1589 = vst [vmem:[%s2129_s6 + $0x50] sm:$0xff] %v1553_v13   ;;  %v977_v20 = vmul.f32 %v1634_v14, %v2111_v51  ;;  %v993_v21 = vmul.f32 %v1682_v15, %v2111_v51 }
 0x12a   : > { %v1636_v22 = vpop.f32.mrf.mxu0  ;;  %v1684_v23 = vpop.f32.mrf.mxu1  ;;  %v1047_v32 = vmax.f32 %v1015_v18, 0.0  ;;  %v1063_v33 = vmax.f32 %v1031_v19, 0.0 }
 0x12b   : > { %v1637_v24 = vadd.f32 %v1636_v22, %v1635_v16  ;;  %v1685_v25 = vadd.f32 %v1684_v23, %v1683_v17  ;;  %v1016_v26 = vadd.f32 %v2118_v59, %v977_v20  ;;  %v1032_v27 = vadd.f32 %v2118_v59, %v993_v21 }
 0x12c   : > { %v1638_v28 = vpop.f32.mrf.mxu0  ;;  %v1686_v29 = vpop.f32.mrf.mxu1 }
 0x12d   : > { %v978_v30 = vmul.f32 %v1637_v24, %v2111_v51  ;;  %v994_v31 = vmul.f32 %v1685_v25, %v2111_v51  ;;  %v1048_v34 = vmax.f32 %v1016_v26, 0.0  ;;  %v1064_v35 = vmax.f32 %v1032_v27, 0.0 }
 0x12e   : > { %v1639_v36 = vpop.f32.mrf.mxu0  ;;  %v1687_v37 = vpop.f32.mrf.mxu1 }
 0x12f   : > { %v1640_v38 = vadd.f32 %v1639_v36, %v1638_v28  ;;  %v1688_v39 = vadd.f32 %v1687_v37, %v1686_v29  ;;  %v1518_v40 = vpack.c.bf16 %v1048_v34, %v1047_v32  ;;  %v1558_v41 = vpack.c.bf16 %v1064_v35, %v1063_v33 }
 0x130   : > { %v1641_v42 = vpop.f32.mrf.mxu0  ;;  %v1689_v43 = vpop.f32.mrf.mxu1  ;;  %v1017_v44 = vadd.f32 %v2118_v59, %v978_v30  ;;  %v1033_v45 = vadd.f32 %v2118_v59, %v994_v31 }
 0x131   : > { %v979_v46 = vmul.f32 %v1640_v38, %v2111_v51  ;;  %v995_v47 = vmul.f32 %v1688_v39, %v2111_v51  ;;  %1582 = vst [vmem:[%s2129_s6 + $0x18] sm:$0xff] %v1518_v40   ;;  %1590 = vst [vmem:[%s2129_s6 + $0x58] sm:$0xff] %v1558_v41  }
 0x132   : > { %v1642_v48 = vpop.f32.mrf.mxu0  ;;  %v1690_v49 = vpop.f32.mrf.mxu1  ;;  %v1049_v57 = vmax.f32 %v1017_v44, 0.0  ;;  %v1065_v58 = vmax.f32 %v1033_v45, 0.0 }
 0x133   : > { %v1018_v50 = vadd.f32 %v2118_v59, %v979_v46  ;;  %v1034_v52 = vadd.f32 %v2118_v59, %v995_v47  ;;  %v1643_v53 = vadd.f32 %v1642_v48, %v1641_v42  ;;  %v1691_v54 = vadd.f32 %v1690_v49, %v1689_v43 }
 0x134   : > { %v1644_v55 = vpop.f32.mrf.mxu0  ;;  %v1692_v56 = vpop.f32.mrf.mxu1 }
 0x135   : > { %v1050_v60 = vmax.f32 %v1018_v50, 0.0  ;;  %v1066_v61 = vmax.f32 %v1034_v52, 0.0  ;;  %v980_v62 = vmul.f32 %v1643_v53, %v2111_v51  ;;  %v996_v63 = vmul.f32 %v1691_v54, %v2111_v51 }
 0x136   : > { %v1645_v0 = vpop.f32.mrf.mxu0  ;;  %v1693_v1 = vpop.f32.mrf.mxu1 }
 0x137   : > { %v1523_v2 = vpack.c.bf16 %v1050_v60, %v1049_v57  ;;  %v1563_v3 = vpack.c.bf16 %v1066_v61, %v1065_v58  ;;  %v1646_v4 = vadd.f32 %v1645_v0, %v1644_v55  ;;  %v1694_v5 = vadd.f32 %v1693_v1, %v1692_v56 }
 0x138   : > { %v1647_v6 = vpop.f32.mrf.mxu0  ;;  %v1695_v7 = vpop.f32.mrf.mxu1  ;;  %v1019_v8 = vadd.f32 %v2118_v59, %v980_v62  ;;  %v1035_v9 = vadd.f32 %v2118_v59, %v996_v63 }
 0x139   : > { %1583 = vst [vmem:[%s2129_s6 + $0x20] sm:$0xff] %v1523_v2   ;;  %1591 = vst [vmem:[%s2129_s6 + $0x60] sm:$0xff] %v1563_v3   ;;  %v981_v10 = vmul.f32 %v1646_v4, %v2111_v51  ;;  %v997_v11 = vmul.f32 %v1694_v5, %v2111_v51 }
 0x13a   : > { %v1648_v12 = vpop.f32.mrf.mxu0  ;;  %v1696_v13 = vpop.f32.mrf.mxu1  ;;  %v1051_v22 = vmax.f32 %v1019_v8, 0.0  ;;  %v1067_v23 = vmax.f32 %v1035_v9, 0.0 }
 0x13b   : > { %v1649_v14 = vadd.f32 %v1648_v12, %v1647_v6  ;;  %v1697_v15 = vadd.f32 %v1696_v13, %v1695_v7  ;;  %v1020_v16 = vadd.f32 %v2118_v59, %v981_v10  ;;  %v1036_v17 = vadd.f32 %v2118_v59, %v997_v11 }
 0x13c   : > { %v1650_v18 = vpop.f32.mrf.mxu0  ;;  %v1698_v19 = vpop.f32.mrf.mxu1 }
 0x13d   : > { %v982_v20 = vmul.f32 %v1649_v14, %v2111_v51  ;;  %v998_v21 = vmul.f32 %v1697_v15, %v2111_v51  ;;  %v1052_v24 = vmax.f32 %v1020_v16, 0.0  ;;  %v1068_v25 = vmax.f32 %v1036_v17, 0.0 }
 0x13e   : > { %v1651_v26 = vpop.f32.mrf.mxu0  ;;  %v1699_v27 = vpop.f32.mrf.mxu1 }
 0x13f   : > { %v1652_v28 = vadd.f32 %v1651_v26, %v1650_v18  ;;  %v1700_v29 = vadd.f32 %v1699_v27, %v1698_v19  ;;  %v1528_v30 = vpack.c.bf16 %v1052_v24, %v1051_v22  ;;  %v1568_v31 = vpack.c.bf16 %v1068_v25, %v1067_v23 }
 0x140   : > { %v1653_v32 = vpop.f32.mrf.mxu0  ;;  %v1701_v33 = vpop.f32.mrf.mxu1  ;;  %v1021_v34 = vadd.f32 %v2118_v59, %v982_v20  ;;  %v1037_v35 = vadd.f32 %v2118_v59, %v998_v21 }
 0x141   : > { %v983_v36 = vmul.f32 %v1652_v28, %v2111_v51  ;;  %v999_v37 = vmul.f32 %v1700_v29, %v2111_v51  ;;  %1584 = vst [vmem:[%s2129_s6 + $0x28] sm:$0xff] %v1528_v30   ;;  %1592 = vst [vmem:[%s2129_s6 + $0x68] sm:$0xff] %v1568_v31  }
 0x142   : > { %v1654_v38 = vpop.f32.mrf.mxu0  ;;  %v1702_v39 = vpop.f32.mrf.mxu1  ;;  %v1053_v46 = vmax.f32 %v1021_v34, 0.0  ;;  %v1069_v47 = vmax.f32 %v1037_v35, 0.0 }
 0x143   : > { %v1022_v40 = vadd.f32 %v2118_v59, %v983_v36  ;;  %v1038_v41 = vadd.f32 %v2118_v59, %v999_v37  ;;  %v1655_v42 = vadd.f32 %v1654_v38, %v1653_v32  ;;  %v1703_v43 = vadd.f32 %v1702_v39, %v1701_v33 }
 0x144   : > { %v1656_v44 = vpop.f32.mrf.mxu0  ;;  %v1704_v45 = vpop.f32.mrf.mxu1 }
 0x145   : > { %v1054_v48 = vmax.f32 %v1022_v40, 0.0  ;;  %v1070_v49 = vmax.f32 %v1038_v41, 0.0  ;;  %v984_v50 = vmul.f32 %v1655_v42, %v2111_v51  ;;  %v1000_v52 = vmul.f32 %v1703_v43, %v2111_v51 }
 0x146   : > { %v1657_v53 = vpop.f32.mrf.mxu0  ;;  %v1705_v54 = vpop.f32.mrf.mxu1 }
 0x147   : > { %v1533_v55 = vpack.c.bf16 %v1054_v48, %v1053_v46  ;;  %v1573_v56 = vpack.c.bf16 %v1070_v49, %v1069_v47  ;;  %v1658_v57 = vadd.f32 %v1657_v53, %v1656_v44  ;;  %v1706_v58 = vadd.f32 %v1705_v54, %v1704_v45 }
 0x148   : > { %v1023_v60 = vadd.f32 %v2118_v59, %v984_v50  ;;  %v1039_v61 = vadd.f32 %v2118_v59, %v1000_v52 }
 0x149   : > { %1585 = vst [vmem:[%s2129_s6 + $0x30] sm:$0xff] %v1533_v55   ;;  %1593 = vst [vmem:[%s2129_s6 + $0x70] sm:$0xff] %v1573_v56   ;;  %v985_v62 = vmul.f32 %v1658_v57, %v2111_v51  ;;  %v1001_v63 = vmul.f32 %v1706_v58, %v2111_v51 }
 0x14a   : > { %v1055_v2 = vmax.f32 %v1023_v60, 0.0  ;;  %v1071_v3 = vmax.f32 %v1039_v61, 0.0 }
 0x14b   : > { %v1024_v0 = vadd.f32 %v2118_v59, %v985_v62  ;;  %v1040_v1 = vadd.f32 %v2118_v59, %v1001_v63 }
 0x14d   : > { %v1056_v4 = vmax.f32 %v1024_v0, 0.0  ;;  %v1072_v5 = vmax.f32 %v1040_v1, 0.0 }
 0x14f   : > { %v1538_v6 = vpack.c.bf16 %v1056_v4, %v1055_v2  ;;  %v1578_v7 = vpack.c.bf16 %v1072_v5, %v1071_v3 }
 0x151   : > { %1586 = vst [vmem:[%s2129_s6 + $0x38] sm:$0xff] %v1538_v6   ;;  %1594 = vst [vmem:[%s2129_s6 + $0x78] sm:$0xff] %v1578_v7  }
 0x152 PF: > { %s17_s20 = sadd.s32 1, %s1922_s20   ;;  %s2229_s15 = smov %s1906_s16 }
 0x153   : > { %p14_p8 = scmp.ge.s32.totalorder %s17_s20, 10   ;;  %s2230_s16 = smov %s1910_s17 }
 0x154   : > { %s2231_s17 = smov %s2001_s27  ;;  %s2232_s18 = smov %s1918_s19 }
 0x155   : > { %s2233_s19 = smov %s2235_s22  ;;  %16 = sbr.rel (!%p14_p8) target bundleno = 4 (0x4), region = 93 }
 0x15a   :  { %1261 = vsyncpa [#allocation4], 1 }
 0x15b   :  { %1263 = vsyncpa [#allocation4 + $0x1], 1 }

</bundles_post_ra>
